<compile_context>
chip_gen: v5e
topology: v5e:2x2
jax: 0.10.0
libtpu: 0.0.40
codegen_flags: <defaults>
</compile_context>

<pallas_src>
import functools

import jax
import jax.numpy as jnp
from jax.experimental import pallas as pl
from jax.experimental.pallas import tpu as pltpu

# norse LIFParameters defaults
TAU_SYN_INV = 1.0 / 5e-3   # 200.0
TAU_MEM_INV = 1.0 / 1e-2   # 100.0
V_LEAK = 0.0
V_TH = 1.0
V_RESET = 0.0
DT = 0.001


def _lif_step(h, v, i):
    """One feed-forward LIF step. Returns (z, v_new, i_new)."""
    v_dec = v + DT * TAU_MEM_INV * ((V_LEAK - v) + i)
    i_dec = i + DT * TAU_SYN_INV * (-i)
    z = (v_dec - V_TH > 0.0).astype(jnp.float32)   # norse heaviside: x > 0
    v_new = (1.0 - z) * v_dec + z * V_RESET
    i_new = i_dec + h
    return z, v_new, i_new


def _eeg_lif_kernel(x_ref, w1_ref, b1_ref, w2_ref, b2_ref, o_ref, *, T, B):
    """Single-invocation kernel.

    x_ref : (T*B, C)  VMEM   time-flattened input
    w1_ref: (C, H)    VMEM
    b1_ref: (1, H)    VMEM
    w2_ref: (1, H)    VMEM   second linear's weight as a row (VPU path)
    b2_ref: (1, 1)    SMEM   scalar bias
    o_ref : (T, B, 1) VMEM   spikes of the second LIF layer
    """
    H = w1_ref.shape[1]

    # --- Hoisted, state-independent first Linear: one MXU call for all T*B rows.
    h1_all = jnp.dot(x_ref[...], w1_ref[...],
                     preferred_element_type=jnp.float32) + b1_ref[...]   # (T*B, H)

    # --- Loop-invariant broadcasts hoisted out of the unrolled time loop.
    w2_row = jnp.broadcast_to(w2_ref[...], (B, H))                       # (B, H)
    b2_col = jnp.full((B, 1), b2_ref[0, 0], jnp.float32)                 # (B, 1)

    # --- LIF state carried in vregs (no VMEM scratch round-trips).
    v1 = jnp.zeros((B, H), jnp.float32)
    i1 = jnp.zeros((B, H), jnp.float32)
    v2 = jnp.zeros((B, 1), jnp.float32)
    i2 = jnp.zeros((B, 1), jnp.float32)

    # --- Fully unrolled time recurrence (T is static and small).
    for t in range(T):
        h1 = h1_all[t * B:(t + 1) * B, :]                 # (B, H) static slice
        z1, v1, i1 = _lif_step(h1, v1, i1)

        # Linear(20, 1) on the VPU + XLU: an MXU matmul with N=1 would waste a
        # full pass + result-FIFO latency per step inside the serial recurrence.
        h2 = jnp.sum(z1 * w2_row, axis=-1, keepdims=True) + b2_col       # (B, 1)

        z2, v2, i2 = _lif_step(h2, v2, i2)
        o_ref[t] = z2   # VMEM store; single HBM writeback happens after the body


def binary_eeg_classifier_lif(x, w1, b1, w2, b2):
    """x: (T, B, C) float32. w1: (C, 20), b1: (1, 20), w2: (20, 1), b2: (1, 1)."""
    T, B, C = x.shape
    H = w1.shape[1]   # 20
    O = w2.shape[1]   # 1

    x_flat = x.reshape(T * B, C)   # lets the first Linear be one hoisted matmul
    w2_row = w2.T                  # (1, H): row layout for the VPU reduce path

    # TODO(synk): for long sequences / large batches, re-introduce a time-chunk
    # grid (LIF state in VMEM scratch, time axis "arbitrary") plus a "parallel"
    # batch axis for v7x's second TensorCore, and budget resident x against
    # VMEM; at this size a single invocation is the fastest configuration.
    kernel = functools.partial(_eeg_lif_kernel, T=T, B=B)
    return pl.pallas_call(
        kernel,
        out_shape=jax.ShapeDtypeStruct((T, B, O), jnp.float32),
        in_specs=[
            pl.BlockSpec(memory_space=pltpu.MemorySpace.VMEM),   # x_flat (T*B, C)
            pl.BlockSpec(memory_space=pltpu.MemorySpace.VMEM),   # w1 (C, H)
            pl.BlockSpec(memory_space=pltpu.MemorySpace.VMEM),   # b1 (1, H)
            pl.BlockSpec(memory_space=pltpu.MemorySpace.VMEM),   # w2 row (1, H)
            pl.BlockSpec(memory_space=pltpu.MemorySpace.SMEM),   # b2 scalar (1, 1)
        ],
        out_specs=pl.BlockSpec(memory_space=pltpu.MemorySpace.VMEM),
    )(x_flat, w1, b1, w2_row, b2)


def _init_linear(key, fan_in, fan_out):
    """PyTorch nn.Linear default init: U(-1/sqrt(fan_in), 1/sqrt(fan_in))."""
    kw, kb = jax.random.split(key)
    bound = 1.0 / (fan_in ** 0.5)
    w = jax.random.uniform(kw, (fan_in, fan_out), jnp.float32, -bound, bound)
    b = jax.random.uniform(kb, (1, fan_out), jnp.float32, -bound, bound)
    return w, b


def _reference(x, w1, b1, w2, b2):
    """Pure-JAX reference for a sanity check."""
    T, B, C = x.shape
    H, O = w1.shape[1], w2.shape[1]
    v1 = jnp.zeros((B, H)); i1 = jnp.zeros((B, H))
    v2 = jnp.zeros((B, O)); i2 = jnp.zeros((B, O))

    def step(carry, xt):
        v1, i1, v2, i2 = carry
        h1 = xt @ w1 + b1
        z1, v1, i1 = _lif_step(h1, v1, i1)
        h2 = z1 @ w2 + b2
        z2, v2, i2 = _lif_step(h2, v2, i2)
        return (v1, i1, v2, i2), z2

    _, out = jax.lax.scan(step, (v1, i1, v2, i2), x)
    return out


if __name__ == "__main__":
    key = jax.random.PRNGKey(0)
    k_x, k_l1, k_l2 = jax.random.split(key, 3)

    T, B, C = 8, 2, 8          # seq=8, batch=2, channels=8 (module default)
    H, O = 20, 1

    x = jax.random.normal(k_x, (T, B, C), jnp.float32) * 2.0  # scaled so spikes occur
    w1, b1 = _init_linear(k_l1, C, H)
    w2, b2 = _init_linear(k_l2, H, O)

    out = binary_eeg_classifier_lif(x, w1, b1, w2, b2)
    out = jax.block_until_ready(out)

    ref = _reference(x, w1, b1, w2, b2)
    assert out.shape == (T, B, O), out.shape
    assert jnp.allclose(out, ref, atol=1e-5), "mismatch vs pure-JAX reference"

    print("KERNEL_OK")
</pallas_src>

<mosaic_0001>
module attributes {stable_mosaic.version = 11 : i64} {
  func.func @_eeg_lif_kernel(%arg0: memref<16x8xf32, #tpu.memory_space<vmem>>, %arg1: memref<8x20xf32, #tpu.memory_space<vmem>>, %arg2: memref<1x20xf32, #tpu.memory_space<vmem>>, %arg3: memref<1x20xf32, #tpu.memory_space<vmem>>, %arg4: memref<1x1xf32, #tpu.memory_space<smem>>, %arg5: memref<8x2x1xf32, #tpu.memory_space<vmem>>) attributes {dimension_semantics = [], scalar_prefetch = 0 : i64, scratch_operands = 0 : i64, tpu.core_type = #tpu.core_type<tc>} {
    %c0 = arith.constant 0 : index
    %c0_0 = arith.constant 0 : index
    %0 = vector.load %arg0[%c0, %c0_0] : memref<16x8xf32, #tpu.memory_space<vmem>>, vector<16x8xf32>
    %c0_1 = arith.constant 0 : index
    %c0_2 = arith.constant 0 : index
    %1 = vector.load %arg1[%c0_1, %c0_2] : memref<8x20xf32, #tpu.memory_space<vmem>>, vector<8x20xf32>
    %cst = arith.constant dense<0.000000e+00> : vector<16x20xf32>
    %2 = tpu.matmul %0, %1, %cst {dimension_numbers = #tpu.dot_dimension_numbers<[1], [0], [0], [1], [0, 0, 1, 1], [], []>} : vector<16x8xf32>, vector<8x20xf32>, vector<16x20xf32> -> vector<16x20xf32>
    %c0_3 = arith.constant 0 : index
    %c0_4 = arith.constant 0 : index
    %3 = vector.load %arg2[%c0_3, %c0_4] : memref<1x20xf32, #tpu.memory_space<vmem>>, vector<1x20xf32>
    %4 = vector.broadcast %3 : vector<1x20xf32> to vector<16x20xf32>
    %5 = arith.addf %2, %4 : vector<16x20xf32>
    %c0_5 = arith.constant 0 : index
    %c0_6 = arith.constant 0 : index
    %6 = vector.load %arg3[%c0_5, %c0_6] : memref<1x20xf32, #tpu.memory_space<vmem>>, vector<1x20xf32>
    %7 = vector.shape_cast %6 : vector<1x20xf32> to vector<1x20xf32>
    %8 = vector.broadcast %7 : vector<1x20xf32> to vector<2x20xf32>
    %c0_7 = arith.constant 0 : index
    %c0_8 = arith.constant 0 : index
    %9 = memref.load %arg4[%c0_7, %c0_8] : memref<1x1xf32, #tpu.memory_space<smem>>
    %10 = vector.broadcast %9 : f32 to vector<2x1xf32>
    %cst_9 = arith.constant 0.000000e+00 : f32
    %11 = vector.broadcast %cst_9 : f32 to vector<2x20xf32>
    %cst_10 = arith.constant 0.000000e+00 : f32
    %12 = vector.broadcast %cst_10 : f32 to vector<2x20xf32>
    %cst_11 = arith.constant 0.000000e+00 : f32
    %13 = vector.broadcast %cst_11 : f32 to vector<2x1xf32>
    %cst_12 = arith.constant 0.000000e+00 : f32
    %14 = vector.broadcast %cst_12 : f32 to vector<2x1xf32>
    %15 = vector.extract_strided_slice %5 {offsets = [0, 0], sizes = [2, 20], strides = [1, 1]} : vector<16x20xf32> to vector<2x20xf32>
    %cst_13 = arith.constant 0.000000e+00 : f32
    %16 = vector.broadcast %cst_13 : f32 to vector<2x20xf32>
    %17 = arith.subf %16, %11 : vector<2x20xf32>
    %18 = arith.addf %17, %12 : vector<2x20xf32>
    %cst_14 = arith.constant 1.000000e-01 : f32
    %19 = vector.broadcast %cst_14 : f32 to vector<2x20xf32>
    %20 = arith.mulf %19, %18 : vector<2x20xf32>
    %21 = arith.addf %11, %20 : vector<2x20xf32>
    %cst_15 = arith.constant 0.000000e+00 : f32
    %22 = vector.broadcast %cst_15 : f32 to vector<2x20xf32>
    %23 = arith.subf %22, %12 : vector<2x20xf32>
    %cst_16 = arith.constant 2.000000e-01 : f32
    %24 = vector.broadcast %cst_16 : f32 to vector<2x20xf32>
    %25 = arith.mulf %24, %23 : vector<2x20xf32>
    %26 = arith.addf %12, %25 : vector<2x20xf32>
    %cst_17 = arith.constant 1.000000e+00 : f32
    %27 = vector.broadcast %cst_17 : f32 to vector<2x20xf32>
    %28 = arith.subf %21, %27 : vector<2x20xf32>
    %cst_18 = arith.constant 0.000000e+00 : f32
    %29 = vector.broadcast %cst_18 : f32 to vector<2x20xf32>
    %30 = arith.cmpf ogt, %28, %29 : vector<2x20xf32>
    %31 = arith.extui %30 : vector<2x20xi1> to vector<2x20xi32>
    %32 = arith.sitofp %31 : vector<2x20xi32> to vector<2x20xf32>
    %cst_19 = arith.constant 1.000000e+00 : f32
    %33 = vector.broadcast %cst_19 : f32 to vector<2x20xf32>
    %34 = arith.subf %33, %32 : vector<2x20xf32>
    %35 = arith.mulf %34, %21 : vector<2x20xf32>
    %cst_20 = arith.constant 0.000000e+00 : f32
    %36 = vector.broadcast %cst_20 : f32 to vector<2x20xf32>
    %37 = arith.mulf %32, %36 : vector<2x20xf32>
    %38 = arith.addf %35, %37 : vector<2x20xf32>
    %39 = arith.addf %26, %15 : vector<2x20xf32>
    %40 = arith.mulf %32, %8 : vector<2x20xf32>
    %cst_21 = arith.constant dense<0.000000e+00> : vector<2xf32>
    %41 = vector.multi_reduction <add>, %40, %cst_21 [1] : vector<2x20xf32> to vector<2xf32>
    %42 = vector.shape_cast %41 : vector<2xf32> to vector<2x1xf32>
    %43 = arith.addf %42, %10 : vector<2x1xf32>
    %cst_22 = arith.constant 0.000000e+00 : f32
    %44 = vector.broadcast %cst_22 : f32 to vector<2x1xf32>
    %45 = arith.subf %44, %13 : vector<2x1xf32>
    %46 = arith.addf %45, %14 : vector<2x1xf32>
    %cst_23 = arith.constant 1.000000e-01 : f32
    %47 = vector.broadcast %cst_23 : f32 to vector<2x1xf32>
    %48 = arith.mulf %47, %46 : vector<2x1xf32>
    %49 = arith.addf %13, %48 : vector<2x1xf32>
    %cst_24 = arith.constant 0.000000e+00 : f32
    %50 = vector.broadcast %cst_24 : f32 to vector<2x1xf32>
    %51 = arith.subf %50, %14 : vector<2x1xf32>
    %cst_25 = arith.constant 2.000000e-01 : f32
    %52 = vector.broadcast %cst_25 : f32 to vector<2x1xf32>
    %53 = arith.mulf %52, %51 : vector<2x1xf32>
    %54 = arith.addf %14, %53 : vector<2x1xf32>
    %cst_26 = arith.constant 1.000000e+00 : f32
    %55 = vector.broadcast %cst_26 : f32 to vector<2x1xf32>
    %56 = arith.subf %49, %55 : vector<2x1xf32>
    %cst_27 = arith.constant 0.000000e+00 : f32
    %57 = vector.broadcast %cst_27 : f32 to vector<2x1xf32>
    %58 = arith.cmpf ogt, %56, %57 : vector<2x1xf32>
    %59 = arith.extui %58 : vector<2x1xi1> to vector<2x1xi32>
    %60 = arith.sitofp %59 : vector<2x1xi32> to vector<2x1xf32>
    %cst_28 = arith.constant 1.000000e+00 : f32
    %61 = vector.broadcast %cst_28 : f32 to vector<2x1xf32>
    %62 = arith.subf %61, %60 : vector<2x1xf32>
    %63 = arith.mulf %62, %49 : vector<2x1xf32>
    %cst_29 = arith.constant 0.000000e+00 : f32
    %64 = vector.broadcast %cst_29 : f32 to vector<2x1xf32>
    %65 = arith.mulf %60, %64 : vector<2x1xf32>
    %66 = arith.addf %63, %65 : vector<2x1xf32>
    %67 = arith.addf %54, %43 : vector<2x1xf32>
    %c0_30 = arith.constant 0 : index
    %c0_31 = arith.constant 0 : index
    %c0_32 = arith.constant 0 : index
    %68 = vector.load %arg5[%c0_30, %c0_31, %c0_32] : memref<8x2x1xf32, #tpu.memory_space<vmem>>, vector<1x2x1xf32>
    %69 = vector.shape_cast %68 : vector<1x2x1xf32> to vector<2x1xf32>
    %70 = vector.shape_cast %60 : vector<2x1xf32> to vector<1x2x1xf32>
    tpu.vector_store %arg5[%c0_30, %c0_31, %c0_32], %70 {strides = array<i32>} : memref<8x2x1xf32, #tpu.memory_space<vmem>>, vector<1x2x1xf32>,
    %71 = vector.extract_strided_slice %5 {offsets = [2, 0], sizes = [2, 20], strides = [1, 1]} : vector<16x20xf32> to vector<2x20xf32>
    %cst_33 = arith.constant 0.000000e+00 : f32
    %72 = vector.broadcast %cst_33 : f32 to vector<2x20xf32>
    %73 = arith.subf %72, %38 : vector<2x20xf32>
    %74 = arith.addf %73, %39 : vector<2x20xf32>
    %cst_34 = arith.constant 1.000000e-01 : f32
    %75 = vector.broadcast %cst_34 : f32 to vector<2x20xf32>
    %76 = arith.mulf %75, %74 : vector<2x20xf32>
    %77 = arith.addf %38, %76 : vector<2x20xf32>
    %cst_35 = arith.constant 0.000000e+00 : f32
    %78 = vector.broadcast %cst_35 : f32 to vector<2x20xf32>
    %79 = arith.subf %78, %39 : vector<2x20xf32>
    %cst_36 = arith.constant 2.000000e-01 : f32
    %80 = vector.broadcast %cst_36 : f32 to vector<2x20xf32>
    %81 = arith.mulf %80, %79 : vector<2x20xf32>
    %82 = arith.addf %39, %81 : vector<2x20xf32>
    %cst_37 = arith.constant 1.000000e+00 : f32
    %83 = vector.broadcast %cst_37 : f32 to vector<2x20xf32>
    %84 = arith.subf %77, %83 : vector<2x20xf32>
    %cst_38 = arith.constant 0.000000e+00 : f32
    %85 = vector.broadcast %cst_38 : f32 to vector<2x20xf32>
    %86 = arith.cmpf ogt, %84, %85 : vector<2x20xf32>
    %87 = arith.extui %86 : vector<2x20xi1> to vector<2x20xi32>
    %88 = arith.sitofp %87 : vector<2x20xi32> to vector<2x20xf32>
    %cst_39 = arith.constant 1.000000e+00 : f32
    %89 = vector.broadcast %cst_39 : f32 to vector<2x20xf32>
    %90 = arith.subf %89, %88 : vector<2x20xf32>
    %91 = arith.mulf %90, %77 : vector<2x20xf32>
    %cst_40 = arith.constant 0.000000e+00 : f32
    %92 = vector.broadcast %cst_40 : f32 to vector<2x20xf32>
    %93 = arith.mulf %88, %92 : vector<2x20xf32>
    %94 = arith.addf %91, %93 : vector<2x20xf32>
    %95 = arith.addf %82, %71 : vector<2x20xf32>
    %96 = arith.mulf %88, %8 : vector<2x20xf32>
    %cst_41 = arith.constant dense<0.000000e+00> : vector<2xf32>
    %97 = vector.multi_reduction <add>, %96, %cst_41 [1] : vector<2x20xf32> to vector<2xf32>
    %98 = vector.shape_cast %97 : vector<2xf32> to vector<2x1xf32>
    %99 = arith.addf %98, %10 : vector<2x1xf32>
    %cst_42 = arith.constant 0.000000e+00 : f32
    %100 = vector.broadcast %cst_42 : f32 to vector<2x1xf32>
    %101 = arith.subf %100, %66 : vector<2x1xf32>
    %102 = arith.addf %101, %67 : vector<2x1xf32>
    %cst_43 = arith.constant 1.000000e-01 : f32
    %103 = vector.broadcast %cst_43 : f32 to vector<2x1xf32>
    %104 = arith.mulf %103, %102 : vector<2x1xf32>
    %105 = arith.addf %66, %104 : vector<2x1xf32>
    %cst_44 = arith.constant 0.000000e+00 : f32
    %106 = vector.broadcast %cst_44 : f32 to vector<2x1xf32>
    %107 = arith.subf %106, %67 : vector<2x1xf32>
    %cst_45 = arith.constant 2.000000e-01 : f32
    %108 = vector.broadcast %cst_45 : f32 to vector<2x1xf32>
    %109 = arith.mulf %108, %107 : vector<2x1xf32>
    %110 = arith.addf %67, %109 : vector<2x1xf32>
    %cst_46 = arith.constant 1.000000e+00 : f32
    %111 = vector.broadcast %cst_46 : f32 to vector<2x1xf32>
    %112 = arith.subf %105, %111 : vector<2x1xf32>
    %cst_47 = arith.constant 0.000000e+00 : f32
    %113 = vector.broadcast %cst_47 : f32 to vector<2x1xf32>
    %114 = arith.cmpf ogt, %112, %113 : vector<2x1xf32>
    %115 = arith.extui %114 : vector<2x1xi1> to vector<2x1xi32>
    %116 = arith.sitofp %115 : vector<2x1xi32> to vector<2x1xf32>
    %cst_48 = arith.constant 1.000000e+00 : f32
    %117 = vector.broadcast %cst_48 : f32 to vector<2x1xf32>
    %118 = arith.subf %117, %116 : vector<2x1xf32>
    %119 = arith.mulf %118, %105 : vector<2x1xf32>
    %cst_49 = arith.constant 0.000000e+00 : f32
    %120 = vector.broadcast %cst_49 : f32 to vector<2x1xf32>
    %121 = arith.mulf %116, %120 : vector<2x1xf32>
    %122 = arith.addf %119, %121 : vector<2x1xf32>
    %123 = arith.addf %110, %99 : vector<2x1xf32>
    %c1 = arith.constant 1 : index
    %c0_50 = arith.constant 0 : index
    %c0_51 = arith.constant 0 : index
    %124 = vector.load %arg5[%c1, %c0_50, %c0_51] : memref<8x2x1xf32, #tpu.memory_space<vmem>>, vector<1x2x1xf32>
    %125 = vector.shape_cast %124 : vector<1x2x1xf32> to vector<2x1xf32>
    %126 = vector.shape_cast %116 : vector<2x1xf32> to vector<1x2x1xf32>
    tpu.vector_store %arg5[%c1, %c0_50, %c0_51], %126 {strides = array<i32>} : memref<8x2x1xf32, #tpu.memory_space<vmem>>, vector<1x2x1xf32>,
    %127 = vector.extract_strided_slice %5 {offsets = [4, 0], sizes = [2, 20], strides = [1, 1]} : vector<16x20xf32> to vector<2x20xf32>
    %cst_52 = arith.constant 0.000000e+00 : f32
    %128 = vector.broadcast %cst_52 : f32 to vector<2x20xf32>
    %129 = arith.subf %128, %94 : vector<2x20xf32>
    %130 = arith.addf %129, %95 : vector<2x20xf32>
    %cst_53 = arith.constant 1.000000e-01 : f32
    %131 = vector.broadcast %cst_53 : f32 to vector<2x20xf32>
    %132 = arith.mulf %131, %130 : vector<2x20xf32>
    %133 = arith.addf %94, %132 : vector<2x20xf32>
    %cst_54 = arith.constant 0.000000e+00 : f32
    %134 = vector.broadcast %cst_54 : f32 to vector<2x20xf32>
    %135 = arith.subf %134, %95 : vector<2x20xf32>
    %cst_55 = arith.constant 2.000000e-01 : f32
    %136 = vector.broadcast %cst_55 : f32 to vector<2x20xf32>
    %137 = arith.mulf %136, %135 : vector<2x20xf32>
    %138 = arith.addf %95, %137 : vector<2x20xf32>
    %cst_56 = arith.constant 1.000000e+00 : f32
    %139 = vector.broadcast %cst_56 : f32 to vector<2x20xf32>
    %140 = arith.subf %133, %139 : vector<2x20xf32>
    %cst_57 = arith.constant 0.000000e+00 : f32
    %141 = vector.broadcast %cst_57 : f32 to vector<2x20xf32>
    %142 = arith.cmpf ogt, %140, %141 : vector<2x20xf32>
    %143 = arith.extui %142 : vector<2x20xi1> to vector<2x20xi32>
    %144 = arith.sitofp %143 : vector<2x20xi32> to vector<2x20xf32>
    %cst_58 = arith.constant 1.000000e+00 : f32
    %145 = vector.broadcast %cst_58 : f32 to vector<2x20xf32>
    %146 = arith.subf %145, %144 : vector<2x20xf32>
    %147 = arith.mulf %146, %133 : vector<2x20xf32>
    %cst_59 = arith.constant 0.000000e+00 : f32
    %148 = vector.broadcast %cst_59 : f32 to vector<2x20xf32>
    %149 = arith.mulf %144, %148 : vector<2x20xf32>
    %150 = arith.addf %147, %149 : vector<2x20xf32>
    %151 = arith.addf %138, %127 : vector<2x20xf32>
    %152 = arith.mulf %144, %8 : vector<2x20xf32>
    %cst_60 = arith.constant dense<0.000000e+00> : vector<2xf32>
    %153 = vector.multi_reduction <add>, %152, %cst_60 [1] : vector<2x20xf32> to vector<2xf32>
    %154 = vector.shape_cast %153 : vector<2xf32> to vector<2x1xf32>
    %155 = arith.addf %154, %10 : vector<2x1xf32>
    %cst_61 = arith.constant 0.000000e+00 : f32
    %156 = vector.broadcast %cst_61 : f32 to vector<2x1xf32>
    %157 = arith.subf %156, %122 : vector<2x1xf32>
    %158 = arith.addf %157, %123 : vector<2x1xf32>
    %cst_62 = arith.constant 1.000000e-01 : f32
    %159 = vector.broadcast %cst_62 : f32 to vector<2x1xf32>
    %160 = arith.mulf %159, %158 : vector<2x1xf32>
    %161 = arith.addf %122, %160 : vector<2x1xf32>
    %cst_63 = arith.constant 0.000000e+00 : f32
    %162 = vector.broadcast %cst_63 : f32 to vector<2x1xf32>
    %163 = arith.subf %162, %123 : vector<2x1xf32>
    %cst_64 = arith.constant 2.000000e-01 : f32
    %164 = vector.broadcast %cst_64 : f32 to vector<2x1xf32>
    %165 = arith.mulf %164, %163 : vector<2x1xf32>
    %166 = arith.addf %123, %165 : vector<2x1xf32>
    %cst_65 = arith.constant 1.000000e+00 : f32
    %167 = vector.broadcast %cst_65 : f32 to vector<2x1xf32>
    %168 = arith.subf %161, %167 : vector<2x1xf32>
    %cst_66 = arith.constant 0.000000e+00 : f32
    %169 = vector.broadcast %cst_66 : f32 to vector<2x1xf32>
    %170 = arith.cmpf ogt, %168, %169 : vector<2x1xf32>
    %171 = arith.extui %170 : vector<2x1xi1> to vector<2x1xi32>
    %172 = arith.sitofp %171 : vector<2x1xi32> to vector<2x1xf32>
    %cst_67 = arith.constant 1.000000e+00 : f32
    %173 = vector.broadcast %cst_67 : f32 to vector<2x1xf32>
    %174 = arith.subf %173, %172 : vector<2x1xf32>
    %175 = arith.mulf %174, %161 : vector<2x1xf32>
    %cst_68 = arith.constant 0.000000e+00 : f32
    %176 = vector.broadcast %cst_68 : f32 to vector<2x1xf32>
    %177 = arith.mulf %172, %176 : vector<2x1xf32>
    %178 = arith.addf %175, %177 : vector<2x1xf32>
    %179 = arith.addf %166, %155 : vector<2x1xf32>
    %c2 = arith.constant 2 : index
    %c0_69 = arith.constant 0 : index
    %c0_70 = arith.constant 0 : index
    %180 = vector.load %arg5[%c2, %c0_69, %c0_70] : memref<8x2x1xf32, #tpu.memory_space<vmem>>, vector<1x2x1xf32>
    %181 = vector.shape_cast %180 : vector<1x2x1xf32> to vector<2x1xf32>
    %182 = vector.shape_cast %172 : vector<2x1xf32> to vector<1x2x1xf32>
    tpu.vector_store %arg5[%c2, %c0_69, %c0_70], %182 {strides = array<i32>} : memref<8x2x1xf32, #tpu.memory_space<vmem>>, vector<1x2x1xf32>,
    %183 = vector.extract_strided_slice %5 {offsets = [6, 0], sizes = [2, 20], strides = [1, 1]} : vector<16x20xf32> to vector<2x20xf32>
    %cst_71 = arith.constant 0.000000e+00 : f32
    %184 = vector.broadcast %cst_71 : f32 to vector<2x20xf32>
    %185 = arith.subf %184, %150 : vector<2x20xf32>
    %186 = arith.addf %185, %151 : vector<2x20xf32>
    %cst_72 = arith.constant 1.000000e-01 : f32
    %187 = vector.broadcast %cst_72 : f32 to vector<2x20xf32>
    %188 = arith.mulf %187, %186 : vector<2x20xf32>
    %189 = arith.addf %150, %188 : vector<2x20xf32>
    %cst_73 = arith.constant 0.000000e+00 : f32
    %190 = vector.broadcast %cst_73 : f32 to vector<2x20xf32>
    %191 = arith.subf %190, %151 : vector<2x20xf32>
    %cst_74 = arith.constant 2.000000e-01 : f32
    %192 = vector.broadcast %cst_74 : f32 to vector<2x20xf32>
    %193 = arith.mulf %192, %191 : vector<2x20xf32>
    %194 = arith.addf %151, %193 : vector<2x20xf32>
    %cst_75 = arith.constant 1.000000e+00 : f32
    %195 = vector.broadcast %cst_75 : f32 to vector<2x20xf32>
    %196 = arith.subf %189, %195 : vector<2x20xf32>
    %cst_76 = arith.constant 0.000000e+00 : f32
    %197 = vector.broadcast %cst_76 : f32 to vector<2x20xf32>
    %198 = arith.cmpf ogt, %196, %197 : vector<2x20xf32>
    %199 = arith.extui %198 : vector<2x20xi1> to vector<2x20xi32>
    %200 = arith.sitofp %199 : vector<2x20xi32> to vector<2x20xf32>
    %cst_77 = arith.constant 1.000000e+00 : f32
    %201 = vector.broadcast %cst_77 : f32 to vector<2x20xf32>
    %202 = arith.subf %201, %200 : vector<2x20xf32>
    %203 = arith.mulf %202, %189 : vector<2x20xf32>
    %cst_78 = arith.constant 0.000000e+00 : f32
    %204 = vector.broadcast %cst_78 : f32 to vector<2x20xf32>
    %205 = arith.mulf %200, %204 : vector<2x20xf32>
    %206 = arith.addf %203, %205 : vector<2x20xf32>
    %207 = arith.addf %194, %183 : vector<2x20xf32>
    %208 = arith.mulf %200, %8 : vector<2x20xf32>
    %cst_79 = arith.constant dense<0.000000e+00> : vector<2xf32>
    %209 = vector.multi_reduction <add>, %208, %cst_79 [1] : vector<2x20xf32> to vector<2xf32>
    %210 = vector.shape_cast %209 : vector<2xf32> to vector<2x1xf32>
    %211 = arith.addf %210, %10 : vector<2x1xf32>
    %cst_80 = arith.constant 0.000000e+00 : f32
    %212 = vector.broadcast %cst_80 : f32 to vector<2x1xf32>
    %213 = arith.subf %212, %178 : vector<2x1xf32>
    %214 = arith.addf %213, %179 : vector<2x1xf32>
    %cst_81 = arith.constant 1.000000e-01 : f32
    %215 = vector.broadcast %cst_81 : f32 to vector<2x1xf32>
    %216 = arith.mulf %215, %214 : vector<2x1xf32>
    %217 = arith.addf %178, %216 : vector<2x1xf32>
    %cst_82 = arith.constant 0.000000e+00 : f32
    %218 = vector.broadcast %cst_82 : f32 to vector<2x1xf32>
    %219 = arith.subf %218, %179 : vector<2x1xf32>
    %cst_83 = arith.constant 2.000000e-01 : f32
    %220 = vector.broadcast %cst_83 : f32 to vector<2x1xf32>
    %221 = arith.mulf %220, %219 : vector<2x1xf32>
    %222 = arith.addf %179, %221 : vector<2x1xf32>
    %cst_84 = arith.constant 1.000000e+00 : f32
    %223 = vector.broadcast %cst_84 : f32 to vector<2x1xf32>
    %224 = arith.subf %217, %223 : vector<2x1xf32>
    %cst_85 = arith.constant 0.000000e+00 : f32
    %225 = vector.broadcast %cst_85 : f32 to vector<2x1xf32>
    %226 = arith.cmpf ogt, %224, %225 : vector<2x1xf32>
    %227 = arith.extui %226 : vector<2x1xi1> to vector<2x1xi32>
    %228 = arith.sitofp %227 : vector<2x1xi32> to vector<2x1xf32>
    %cst_86 = arith.constant 1.000000e+00 : f32
    %229 = vector.broadcast %cst_86 : f32 to vector<2x1xf32>
    %230 = arith.subf %229, %228 : vector<2x1xf32>
    %231 = arith.mulf %230, %217 : vector<2x1xf32>
    %cst_87 = arith.constant 0.000000e+00 : f32
    %232 = vector.broadcast %cst_87 : f32 to vector<2x1xf32>
    %233 = arith.mulf %228, %232 : vector<2x1xf32>
    %234 = arith.addf %231, %233 : vector<2x1xf32>
    %235 = arith.addf %222, %211 : vector<2x1xf32>
    %c3 = arith.constant 3 : index
    %c0_88 = arith.constant 0 : index
    %c0_89 = arith.constant 0 : index
    %236 = vector.load %arg5[%c3, %c0_88, %c0_89] : memref<8x2x1xf32, #tpu.memory_space<vmem>>, vector<1x2x1xf32>
    %237 = vector.shape_cast %236 : vector<1x2x1xf32> to vector<2x1xf32>
    %238 = vector.shape_cast %228 : vector<2x1xf32> to vector<1x2x1xf32>
    tpu.vector_store %arg5[%c3, %c0_88, %c0_89], %238 {strides = array<i32>} : memref<8x2x1xf32, #tpu.memory_space<vmem>>, vector<1x2x1xf32>,
    %239 = vector.extract_strided_slice %5 {offsets = [8, 0], sizes = [2, 20], strides = [1, 1]} : vector<16x20xf32> to vector<2x20xf32>
    %cst_90 = arith.constant 0.000000e+00 : f32
    %240 = vector.broadcast %cst_90 : f32 to vector<2x20xf32>
    %241 = arith.subf %240, %206 : vector<2x20xf32>
    %242 = arith.addf %241, %207 : vector<2x20xf32>
    %cst_91 = arith.constant 1.000000e-01 : f32
    %243 = vector.broadcast %cst_91 : f32 to vector<2x20xf32>
    %244 = arith.mulf %243, %242 : vector<2x20xf32>
    %245 = arith.addf %206, %244 : vector<2x20xf32>
    %cst_92 = arith.constant 0.000000e+00 : f32
    %246 = vector.broadcast %cst_92 : f32 to vector<2x20xf32>
    %247 = arith.subf %246, %207 : vector<2x20xf32>
    %cst_93 = arith.constant 2.000000e-01 : f32
    %248 = vector.broadcast %cst_93 : f32 to vector<2x20xf32>
    %249 = arith.mulf %248, %247 : vector<2x20xf32>
    %250 = arith.addf %207, %249 : vector<2x20xf32>
    %cst_94 = arith.constant 1.000000e+00 : f32
    %251 = vector.broadcast %cst_94 : f32 to vector<2x20xf32>
    %252 = arith.subf %245, %251 : vector<2x20xf32>
    %cst_95 = arith.constant 0.000000e+00 : f32
    %253 = vector.broadcast %cst_95 : f32 to vector<2x20xf32>
    %254 = arith.cmpf ogt, %252, %253 : vector<2x20xf32>
    %255 = arith.extui %254 : vector<2x20xi1> to vector<2x20xi32>
    %256 = arith.sitofp %255 : vector<2x20xi32> to vector<2x20xf32>
    %cst_96 = arith.constant 1.000000e+00 : f32
    %257 = vector.broadcast %cst_96 : f32 to vector<2x20xf32>
    %258 = arith.subf %257, %256 : vector<2x20xf32>
    %259 = arith.mulf %258, %245 : vector<2x20xf32>
    %cst_97 = arith.constant 0.000000e+00 : f32
    %260 = vector.broadcast %cst_97 : f32 to vector<2x20xf32>
    %261 = arith.mulf %256, %260 : vector<2x20xf32>
    %262 = arith.addf %259, %261 : vector<2x20xf32>
    %263 = arith.addf %250, %239 : vector<2x20xf32>
    %264 = arith.mulf %256, %8 : vector<2x20xf32>
    %cst_98 = arith.constant dense<0.000000e+00> : vector<2xf32>
    %265 = vector.multi_reduction <add>, %264, %cst_98 [1] : vector<2x20xf32> to vector<2xf32>
    %266 = vector.shape_cast %265 : vector<2xf32> to vector<2x1xf32>
    %267 = arith.addf %266, %10 : vector<2x1xf32>
    %cst_99 = arith.constant 0.000000e+00 : f32
    %268 = vector.broadcast %cst_99 : f32 to vector<2x1xf32>
    %269 = arith.subf %268, %234 : vector<2x1xf32>
    %270 = arith.addf %269, %235 : vector<2x1xf32>
    %cst_100 = arith.constant 1.000000e-01 : f32
    %271 = vector.broadcast %cst_100 : f32 to vector<2x1xf32>
    %272 = arith.mulf %271, %270 : vector<2x1xf32>
    %273 = arith.addf %234, %272 : vector<2x1xf32>
    %cst_101 = arith.constant 0.000000e+00 : f32
    %274 = vector.broadcast %cst_101 : f32 to vector<2x1xf32>
    %275 = arith.subf %274, %235 : vector<2x1xf32>
    %cst_102 = arith.constant 2.000000e-01 : f32
    %276 = vector.broadcast %cst_102 : f32 to vector<2x1xf32>
    %277 = arith.mulf %276, %275 : vector<2x1xf32>
    %278 = arith.addf %235, %277 : vector<2x1xf32>
    %cst_103 = arith.constant 1.000000e+00 : f32
    %279 = vector.broadcast %cst_103 : f32 to vector<2x1xf32>
    %280 = arith.subf %273, %279 : vector<2x1xf32>
    %cst_104 = arith.constant 0.000000e+00 : f32
    %281 = vector.broadcast %cst_104 : f32 to vector<2x1xf32>
    %282 = arith.cmpf ogt, %280, %281 : vector<2x1xf32>
    %283 = arith.extui %282 : vector<2x1xi1> to vector<2x1xi32>
    %284 = arith.sitofp %283 : vector<2x1xi32> to vector<2x1xf32>
    %cst_105 = arith.constant 1.000000e+00 : f32
    %285 = vector.broadcast %cst_105 : f32 to vector<2x1xf32>
    %286 = arith.subf %285, %284 : vector<2x1xf32>
    %287 = arith.mulf %286, %273 : vector<2x1xf32>
    %cst_106 = arith.constant 0.000000e+00 : f32
    %288 = vector.broadcast %cst_106 : f32 to vector<2x1xf32>
    %289 = arith.mulf %284, %288 : vector<2x1xf32>
    %290 = arith.addf %287, %289 : vector<2x1xf32>
    %291 = arith.addf %278, %267 : vector<2x1xf32>
    %c4 = arith.constant 4 : index
    %c0_107 = arith.constant 0 : index
    %c0_108 = arith.constant 0 : index
    %292 = vector.load %arg5[%c4, %c0_107, %c0_108] : memref<8x2x1xf32, #tpu.memory_space<vmem>>, vector<1x2x1xf32>
    %293 = vector.shape_cast %292 : vector<1x2x1xf32> to vector<2x1xf32>
    %294 = vector.shape_cast %284 : vector<2x1xf32> to vector<1x2x1xf32>
    tpu.vector_store %arg5[%c4, %c0_107, %c0_108], %294 {strides = array<i32>} : memref<8x2x1xf32, #tpu.memory_space<vmem>>, vector<1x2x1xf32>,
    %295 = vector.extract_strided_slice %5 {offsets = [10, 0], sizes = [2, 20], strides = [1, 1]} : vector<16x20xf32> to vector<2x20xf32>
    %cst_109 = arith.constant 0.000000e+00 : f32
    %296 = vector.broadcast %cst_109 : f32 to vector<2x20xf32>
    %297 = arith.subf %296, %262 : vector<2x20xf32>
    %298 = arith.addf %297, %263 : vector<2x20xf32>
    %cst_110 = arith.constant 1.000000e-01 : f32
    %299 = vector.broadcast %cst_110 : f32 to vector<2x20xf32>
    %300 = arith.mulf %299, %298 : vector<2x20xf32>
    %301 = arith.addf %262, %300 : vector<2x20xf32>
    %cst_111 = arith.constant 0.000000e+00 : f32
    %302 = vector.broadcast %cst_111 : f32 to vector<2x20xf32>
    %303 = arith.subf %302, %263 : vector<2x20xf32>
    %cst_112 = arith.constant 2.000000e-01 : f32
    %304 = vector.broadcast %cst_112 : f32 to vector<2x20xf32>
    %305 = arith.mulf %304, %303 : vector<2x20xf32>
    %306 = arith.addf %263, %305 : vector<2x20xf32>
    %cst_113 = arith.constant 1.000000e+00 : f32
    %307 = vector.broadcast %cst_113 : f32 to vector<2x20xf32>
    %308 = arith.subf %301, %307 : vector<2x20xf32>
    %cst_114 = arith.constant 0.000000e+00 : f32
    %309 = vector.broadcast %cst_114 : f32 to vector<2x20xf32>
    %310 = arith.cmpf ogt, %308, %309 : vector<2x20xf32>
    %311 = arith.extui %310 : vector<2x20xi1> to vector<2x20xi32>
    %312 = arith.sitofp %311 : vector<2x20xi32> to vector<2x20xf32>
    %cst_115 = arith.constant 1.000000e+00 : f32
    %313 = vector.broadcast %cst_115 : f32 to vector<2x20xf32>
    %314 = arith.subf %313, %312 : vector<2x20xf32>
    %315 = arith.mulf %314, %301 : vector<2x20xf32>
    %cst_116 = arith.constant 0.000000e+00 : f32
    %316 = vector.broadcast %cst_116 : f32 to vector<2x20xf32>
    %317 = arith.mulf %312, %316 : vector<2x20xf32>
    %318 = arith.addf %315, %317 : vector<2x20xf32>
    %319 = arith.addf %306, %295 : vector<2x20xf32>
    %320 = arith.mulf %312, %8 : vector<2x20xf32>
    %cst_117 = arith.constant dense<0.000000e+00> : vector<2xf32>
    %321 = vector.multi_reduction <add>, %320, %cst_117 [1] : vector<2x20xf32> to vector<2xf32>
    %322 = vector.shape_cast %321 : vector<2xf32> to vector<2x1xf32>
    %323 = arith.addf %322, %10 : vector<2x1xf32>
    %cst_118 = arith.constant 0.000000e+00 : f32
    %324 = vector.broadcast %cst_118 : f32 to vector<2x1xf32>
    %325 = arith.subf %324, %290 : vector<2x1xf32>
    %326 = arith.addf %325, %291 : vector<2x1xf32>
    %cst_119 = arith.constant 1.000000e-01 : f32
    %327 = vector.broadcast %cst_119 : f32 to vector<2x1xf32>
    %328 = arith.mulf %327, %326 : vector<2x1xf32>
    %329 = arith.addf %290, %328 : vector<2x1xf32>
    %cst_120 = arith.constant 0.000000e+00 : f32
    %330 = vector.broadcast %cst_120 : f32 to vector<2x1xf32>
    %331 = arith.subf %330, %291 : vector<2x1xf32>
    %cst_121 = arith.constant 2.000000e-01 : f32
    %332 = vector.broadcast %cst_121 : f32 to vector<2x1xf32>
    %333 = arith.mulf %332, %331 : vector<2x1xf32>
    %334 = arith.addf %291, %333 : vector<2x1xf32>
    %cst_122 = arith.constant 1.000000e+00 : f32
    %335 = vector.broadcast %cst_122 : f32 to vector<2x1xf32>
    %336 = arith.subf %329, %335 : vector<2x1xf32>
    %cst_123 = arith.constant 0.000000e+00 : f32
    %337 = vector.broadcast %cst_123 : f32 to vector<2x1xf32>
    %338 = arith.cmpf ogt, %336, %337 : vector<2x1xf32>
    %339 = arith.extui %338 : vector<2x1xi1> to vector<2x1xi32>
    %340 = arith.sitofp %339 : vector<2x1xi32> to vector<2x1xf32>
    %cst_124 = arith.constant 1.000000e+00 : f32
    %341 = vector.broadcast %cst_124 : f32 to vector<2x1xf32>
    %342 = arith.subf %341, %340 : vector<2x1xf32>
    %343 = arith.mulf %342, %329 : vector<2x1xf32>
    %cst_125 = arith.constant 0.000000e+00 : f32
    %344 = vector.broadcast %cst_125 : f32 to vector<2x1xf32>
    %345 = arith.mulf %340, %344 : vector<2x1xf32>
    %346 = arith.addf %343, %345 : vector<2x1xf32>
    %347 = arith.addf %334, %323 : vector<2x1xf32>
    %c5 = arith.constant 5 : index
    %c0_126 = arith.constant 0 : index
    %c0_127 = arith.constant 0 : index
    %348 = vector.load %arg5[%c5, %c0_126, %c0_127] : memref<8x2x1xf32, #tpu.memory_space<vmem>>, vector<1x2x1xf32>
    %349 = vector.shape_cast %348 : vector<1x2x1xf32> to vector<2x1xf32>
    %350 = vector.shape_cast %340 : vector<2x1xf32> to vector<1x2x1xf32>
    tpu.vector_store %arg5[%c5, %c0_126, %c0_127], %350 {strides = array<i32>} : memref<8x2x1xf32, #tpu.memory_space<vmem>>, vector<1x2x1xf32>,
    %cst_128 = arith.constant 0.000000e+00 : f32
    %351 = vector.broadcast %cst_128 : f32 to vector<2x20xf32>
    %352 = arith.subf %351, %318 : vector<2x20xf32>
    %353 = arith.addf %352, %319 : vector<2x20xf32>
    %cst_129 = arith.constant 1.000000e-01 : f32
    %354 = vector.broadcast %cst_129 : f32 to vector<2x20xf32>
    %355 = arith.mulf %354, %353 : vector<2x20xf32>
    %356 = arith.addf %318, %355 : vector<2x20xf32>
    %cst_130 = arith.constant 1.000000e+00 : f32
    %357 = vector.broadcast %cst_130 : f32 to vector<2x20xf32>
    %358 = arith.subf %356, %357 : vector<2x20xf32>
    %cst_131 = arith.constant 0.000000e+00 : f32
    %359 = vector.broadcast %cst_131 : f32 to vector<2x20xf32>
    %360 = arith.cmpf ogt, %358, %359 : vector<2x20xf32>
    %361 = arith.extui %360 : vector<2x20xi1> to vector<2x20xi32>
    %362 = arith.sitofp %361 : vector<2x20xi32> to vector<2x20xf32>
    %363 = arith.mulf %362, %8 : vector<2x20xf32>
    %cst_132 = arith.constant dense<0.000000e+00> : vector<2xf32>
    %364 = vector.multi_reduction <add>, %363, %cst_132 [1] : vector<2x20xf32> to vector<2xf32>
    %365 = vector.shape_cast %364 : vector<2xf32> to vector<2x1xf32>
    %366 = arith.addf %365, %10 : vector<2x1xf32>
    %cst_133 = arith.constant 0.000000e+00 : f32
    %367 = vector.broadcast %cst_133 : f32 to vector<2x1xf32>
    %368 = arith.subf %367, %346 : vector<2x1xf32>
    %369 = arith.addf %368, %347 : vector<2x1xf32>
    %cst_134 = arith.constant 1.000000e-01 : f32
    %370 = vector.broadcast %cst_134 : f32 to vector<2x1xf32>
    %371 = arith.mulf %370, %369 : vector<2x1xf32>
    %372 = arith.addf %346, %371 : vector<2x1xf32>
    %cst_135 = arith.constant 0.000000e+00 : f32
    %373 = vector.broadcast %cst_135 : f32 to vector<2x1xf32>
    %374 = arith.subf %373, %347 : vector<2x1xf32>
    %cst_136 = arith.constant 2.000000e-01 : f32
    %375 = vector.broadcast %cst_136 : f32 to vector<2x1xf32>
    %376 = arith.mulf %375, %374 : vector<2x1xf32>
    %377 = arith.addf %347, %376 : vector<2x1xf32>
    %cst_137 = arith.constant 1.000000e+00 : f32
    %378 = vector.broadcast %cst_137 : f32 to vector<2x1xf32>
    %379 = arith.subf %372, %378 : vector<2x1xf32>
    %cst_138 = arith.constant 0.000000e+00 : f32
    %380 = vector.broadcast %cst_138 : f32 to vector<2x1xf32>
    %381 = arith.cmpf ogt, %379, %380 : vector<2x1xf32>
    %382 = arith.extui %381 : vector<2x1xi1> to vector<2x1xi32>
    %383 = arith.sitofp %382 : vector<2x1xi32> to vector<2x1xf32>
    %cst_139 = arith.constant 1.000000e+00 : f32
    %384 = vector.broadcast %cst_139 : f32 to vector<2x1xf32>
    %385 = arith.subf %384, %383 : vector<2x1xf32>
    %386 = arith.mulf %385, %372 : vector<2x1xf32>
    %cst_140 = arith.constant 0.000000e+00 : f32
    %387 = vector.broadcast %cst_140 : f32 to vector<2x1xf32>
    %388 = arith.mulf %383, %387 : vector<2x1xf32>
    %389 = arith.addf %386, %388 : vector<2x1xf32>
    %390 = arith.addf %377, %366 : vector<2x1xf32>
    %c6 = arith.constant 6 : index
    %c0_141 = arith.constant 0 : index
    %c0_142 = arith.constant 0 : index
    %391 = vector.load %arg5[%c6, %c0_141, %c0_142] : memref<8x2x1xf32, #tpu.memory_space<vmem>>, vector<1x2x1xf32>
    %392 = vector.shape_cast %391 : vector<1x2x1xf32> to vector<2x1xf32>
    %393 = vector.shape_cast %383 : vector<2x1xf32> to vector<1x2x1xf32>
    tpu.vector_store %arg5[%c6, %c0_141, %c0_142], %393 {strides = array<i32>} : memref<8x2x1xf32, #tpu.memory_space<vmem>>, vector<1x2x1xf32>,
    %cst_143 = arith.constant 0.000000e+00 : f32
    %394 = vector.broadcast %cst_143 : f32 to vector<2x1xf32>
    %395 = arith.subf %394, %389 : vector<2x1xf32>
    %396 = arith.addf %395, %390 : vector<2x1xf32>
    %cst_144 = arith.constant 1.000000e-01 : f32
    %397 = vector.broadcast %cst_144 : f32 to vector<2x1xf32>
    %398 = arith.mulf %397, %396 : vector<2x1xf32>
    %399 = arith.addf %389, %398 : vector<2x1xf32>
    %cst_145 = arith.constant 1.000000e+00 : f32
    %400 = vector.broadcast %cst_145 : f32 to vector<2x1xf32>
    %401 = arith.subf %399, %400 : vector<2x1xf32>
    %cst_146 = arith.constant 0.000000e+00 : f32
    %402 = vector.broadcast %cst_146 : f32 to vector<2x1xf32>
    %403 = arith.cmpf ogt, %401, %402 : vector<2x1xf32>
    %404 = arith.extui %403 : vector<2x1xi1> to vector<2x1xi32>
    %405 = arith.sitofp %404 : vector<2x1xi32> to vector<2x1xf32>
    %c7 = arith.constant 7 : index
    %c0_147 = arith.constant 0 : index
    %c0_148 = arith.constant 0 : index
    %406 = vector.load %arg5[%c7, %c0_147, %c0_148] : memref<8x2x1xf32, #tpu.memory_space<vmem>>, vector<1x2x1xf32>
    %407 = vector.shape_cast %406 : vector<1x2x1xf32> to vector<2x1xf32>
    %408 = vector.shape_cast %405 : vector<2x1xf32> to vector<1x2x1xf32>
    tpu.vector_store %arg5[%c7, %c0_147, %c0_148], %408 {strides = array<i32>} : memref<8x2x1xf32, #tpu.memory_space<vmem>>, vector<1x2x1xf32>,
    return
  }
}

</mosaic_0001>

<bundles_post_ra>
// kernel: tpu_custom_call.1
= control target key start
LH: loop header
LB: loop body
LE: loop exit
PB: predicated region body
PF: predicated region fallthrough
CT: control target
= control target key end

     0   :  { %vm28_vm0 = vcmask 64512   ;;  %vm73_vm1 = vcmask 162816   ;;  %v370_v15 = vmov 0.0   ;;  %vm101_vm3 = vcmask 156672   ;;  %s489_s1 = inlined_call_operand.vmem [shape: f32[8,20], index: 1, kind: input, shape index: {}]   ;;  %s490_s0 = inlined_call_operand.vmem [shape: f32[16,8], index: 0, kind: input, shape index: {}]   ;;  %s491_s3 = inlined_call_operand.vmem [shape: f32[1,20], index: 3, kind: input, shape index: {}]   ;;  %s492_s2 = inlined_call_operand.vmem [shape: f32[1,20], index: 2, kind: input, shape index: {}]   ;;  %s493_s4 = inlined_call_operand.<no memory space> [shape: f32[1,1], index: 4, kind: input, shape index: {}]   ;;  %s494_s5 = inlined_call_operand.vmem [shape: f32[8,2,1], index: 5, kind: output, shape index: {}]  }
   0x1   :  { %v23_v0 = vld [vmem:[%s489_s1] sm:$0xff]  ;;  %v22_v2 = vld [vmem:[%s490_s0 + $0x8] sm:$0xff]  ;;  %vm79_vm7 = vcmask 1024  }
   0x2   :  { %v21_v1 = vld [vmem:[%s490_s0] sm:$0xff]  ;;  %50 = vmatpush.msra.mxu0 %v23_v0  ;;  %366 = vmatpush.msra.mxu1 %v23_v0  ;;  %80 = vst.msk [vmem:[%s494_s5] sm:$0x3] %vm79_vm7, %v370_v15 }
   0x3   :  { %v413_v3 = vld [vmem:[%s491_s3] ss:$0 sm:$0xff]  ;;  %331 = vmatmul.msk.f32.vlgmr.msra.gmra.mxu0 %vm28_vm0, %v21_v1  ;;  %332 = vmatmul.msk.f32.vlgmr.msra.gmra.mxu1 %vm28_vm0, %v22_v2 }
   0x4   :  { %v72_v4 = vmul.f32 0.0, %v413_v3  ;;  %v369_v6 = vld [vmem:[%s492_s2] ss:$0 sm:$0xff] }
   0x6   :  { %v74_v5 = vsel %vm73_vm1, %v72_v4, 0.0 }
   0x7   :  { %75 = vadd.xlane.f32.xlu0 %v74_v5 }
  0x80   :  { %v52_v7 = vpop.f32.mrf.mxu0  ;;  %v55_v38 = vpop.f32.mrf.mxu1 }
  0x81   :  { %v53_v8 = vadd.f32 %v369_v6, %v52_v7  ;;  %v56_v44 = vadd.f32 %v369_v6, %v55_v38 }
  0x83   :  { %v85_v9 = vsub.f32 0.0, %v53_v8  ;;  %v83_v10 = vmul.f32 0.1, %v53_v8  ;;  %v97_v14 = vrot.slane %v53_v8, 2  ;;  %v138_v28 = vrot.slane %v53_v8, 4 }
  0x84   :  { %v179_v36 = vrot.slane %v53_v8, 6  ;;  %v260_v56 = vrot.slane %v56_v44, 2 }
  0x85   :  { %v86_v11 = vmul.f32 0.2, %v85_v9  ;;  %v333_v12 = vadd.f32 -1.0, %v83_v10 }
  0x87   :  { %v87_v13 = vadd.f32 %v86_v11, %v53_v8  ;;  %vm89_vm2 = vcmp.gt.f32.partialorder %v333_v12, 0.0 }
  0x88   :  { %v334_v16 = vsel %vm89_vm2, 1.0, %v370_v15 }
  0x89   :  { %v99_v17 = vadd.f32 %v97_v14, %v87_v13  ;;  %v100_v18 = vmul.f32 %v413_v3, %v334_v16  ;;  %v92_v19 = vsub.f32 1.0, %v334_v16  ;;  %v94_v22 = vmul.f32 0.0, %v334_v16 }
  0x8b   :  { %v102_v20 = vsel %vm101_vm3, %v100_v18, 0.0  ;;  %v93_v21 = vmul.f32 %v92_v19, %v83_v10  ;;  %v127_v23 = vsub.f32 0.0, %v99_v17 }
  0x8c   :  { %103 = vadd.xlane.f32.xlu0 %v102_v20  ;;  %v434_v20 = vstv %s493_s4 }
  0x8d   :  { %v95_v24 = vadd.f32 %v94_v22, %v93_v21  ;;  %v128_v25 = vmul.f32 0.2, %v127_v23  ;;  %v76_v21 = vpop.xlane.xlu0 %75 }
  0x8e   :  { %v77_v23 = vadd.f32 %v76_v21, %v434_v20 }
  0x8f   :  { %v123_v26 = vsub.f32 0.0, %v95_v24  ;;  %v129_v27 = vadd.f32 %v128_v25, %v99_v17 }
  0x90   :  { %v107_v25 = vmul.f32 0.1, %v77_v23 }
  0x91   :  { %v140_v29 = vadd.f32 %v138_v28, %v129_v27  ;;  %v124_v30 = vadd.f32 %v123_v26, %v99_v17 }
  0x92   :  { %v335_v27 = vadd.f32 -1.0, %v107_v25 }
  0x93   :  { %v168_v31 = vsub.f32 0.0, %v140_v29  ;;  %v125_v32 = vmul.f32 0.1, %v124_v30 }
  0x94   :  { %vm113_vm8 = vcmp.gt.f32.partialorder %v335_v27, 0.0 }
  0x95   :  { %v169_v33 = vmul.f32 0.2, %v168_v31  ;;  %v126_v34 = vadd.f32 %v125_v32, %v95_v24 }
  0x97   :  { %v170_v35 = vadd.f32 %v169_v33, %v140_v29  ;;  %v338_v37 = vadd.f32 -1.0, %v126_v34 }
  0x99   :  { %v181_v39 = vadd.f32 %v179_v36, %v170_v35  ;;  %vm131_vm4 = vcmp.gt.f32.partialorder %v338_v37, 0.0 }
  0x9a   :  { %v339_v40 = vsel %vm131_vm4, 1.0, %v370_v15 }
  0x9b   :  { %v209_v41 = vsub.f32 0.0, %v181_v39  ;;  %v141_v42 = vmul.f32 %v413_v3, %v339_v40  ;;  %v134_v43 = vsub.f32 1.0, %v339_v40  ;;  %v136_v48 = vmul.f32 0.0, %v339_v40 }
  0x9d   :  { %v210_v45 = vmul.f32 0.2, %v209_v41  ;;  %v142_v46 = vsel %vm101_vm3, %v141_v42, 0.0  ;;  %v135_v47 = vmul.f32 %v134_v43, %v126_v34 }
  0x9e   :  { %143 = vadd.xlane.f32.xlu1 %v142_v46  ;;  %v109_v46 = vsub.f32 0.0, %v77_v23 }
  0x9f   :  { %v211_v49 = vadd.f32 %v210_v45, %v181_v39  ;;  %v137_v50 = vadd.f32 %v136_v48, %v135_v47 }
  0xa1   :  { %v220_v51 = vadd.f32 %v211_v49, %v56_v44  ;;  %v164_v52 = vsub.f32 0.0, %v137_v50  ;;  %v110_v49 = vmul.f32 0.2, %v109_v46 }
  0xa3   :  { %v248_v53 = vsub.f32 0.0, %v220_v51  ;;  %v165_v54 = vadd.f32 %v164_v52, %v140_v29  ;;  %v336_v29 = vsel %vm113_vm8, 1.0, %v370_v15  ;;  %v111_v52 = vadd.f32 %v110_v49, %v77_v23 }
  0xa4   :  { %337 = vst.msk [vmem:[%s494_s5 + $0x2] sm:$0x3] %vm79_vm7, %v336_v29  ;;  %v116_v45 = vsub.f32 1.0, %v336_v29  ;;  %v118_v48 = vmul.f32 0.0, %v336_v29 }
  0xa5   :  { %v249_v55 = vmul.f32 0.2, %v248_v53  ;;  %v166_v57 = vmul.f32 0.1, %v165_v54 }
  0xa6   :  { %v117_v47 = vmul.f32 %v116_v45, %v107_v25 }
  0xa7   :  { %v250_v58 = vadd.f32 %v249_v55, %v220_v51  ;;  %v167_v59 = vadd.f32 %v166_v57, %v137_v50 }
  0xa8   :  { %v119_v50 = vadd.f32 %v118_v48, %v117_v47 }
  0xa9   :  { %v262_v60 = vadd.f32 %v260_v56, %v250_v58  ;;  %v343_v61 = vadd.f32 -1.0, %v167_v59 }
  0xaa   :  { %v146_v54 = vsub.f32 0.0, %v119_v50 }
  0xab   :  { %vm172_vm5 = vcmp.gt.f32.partialorder %v343_v61, 0.0 }
  0xac   :  { %v344_v62 = vsel %vm172_vm5, 1.0, %v370_v15 }
  0xad   :  { %v182_v63 = vmul.f32 %v413_v3, %v344_v62  ;;  %v175_v0 = vsub.f32 1.0, %v344_v62  ;;  %v177_v4 = vmul.f32 0.0, %v344_v62 }
  0xaf   :  { %v183_v1 = vsel %vm101_vm3, %v182_v63, 0.0  ;;  %v176_v2 = vmul.f32 %v175_v0, %v167_v59 }
  0xb0   :  { %184 = vadd.xlane.f32.xlu1 %v183_v1 }
  0xb1   :  { %v178_v5 = vadd.f32 %v177_v4, %v176_v2 }
  0xb3   :  { %v205_v6 = vsub.f32 0.0, %v178_v5 }
  0xb5   :  { %v206_v7 = vadd.f32 %v205_v6, %v181_v39 }
  0xb7   :  { %v207_v8 = vmul.f32 0.1, %v206_v7 }
  0xb9   :  { %v208_v9 = vadd.f32 %v207_v8, %v178_v5 }
  0xbb   :  { %v348_v10 = vadd.f32 -1.0, %v208_v9 }
  0xbd   :  { %vm213_vm6 = vcmp.gt.f32.partialorder %v348_v10, 0.0 }
  0xbe   :  { %v349_v11 = vsel %vm213_vm6, 1.0, %v370_v15 }
  0xbf   :  { %v221_v12 = vmul.f32 %v413_v3, %v349_v11  ;;  %v216_v13 = vsub.f32 1.0, %v349_v11  ;;  %v218_v17 = vmul.f32 0.0, %v349_v11 }
  0xc1   :  { %v222_v14 = vsel %vm101_vm3, %v221_v12, 0.0  ;;  %v217_v16 = vmul.f32 %v216_v13, %v208_v9 }
  0xc2   :  { %223 = vadd.xlane.f32.xlu2 %v222_v14 }
  0xc3   :  { %v219_v18 = vadd.f32 %v218_v17, %v217_v16 }
  0xc5   :  { %v244_v19 = vsub.f32 0.0, %v219_v18 }
  0xc7   :  { %v245_v22 = vadd.f32 %v244_v19, %v220_v51 }
  0xc9   :  { %v246_v24 = vmul.f32 0.1, %v245_v22 }
  0xcb   :  { %v247_v26 = vadd.f32 %v246_v24, %v219_v18 }
  0xcd   :  { %v353_v28 = vadd.f32 -1.0, %v247_v26 }
  0xcf   :  { %vm252_vm9 = vcmp.gt.f32.partialorder %v353_v28, 0.0 }
  0xd0   :  { %v354_v30 = vsel %vm252_vm9, 1.0, %v370_v15 }
  0xd1   :  { %v263_v31 = vmul.f32 %v413_v3, %v354_v30  ;;  %v255_v32 = vsub.f32 1.0, %v354_v30  ;;  %v257_v35 = vmul.f32 0.0, %v354_v30 }
  0xd3   :  { %v264_v33 = vsel %vm101_vm3, %v263_v31, 0.0  ;;  %v256_v34 = vmul.f32 %v255_v32, %v247_v26 }
  0xd4   :  { %265 = vadd.xlane.f32.xlu2 %v264_v33 }
  0xd5   :  { %v258_v36 = vadd.f32 %v257_v35, %v256_v34 }
  0xd7   :  { %v286_v37 = vsub.f32 0.0, %v258_v36 }
  0xd9   :  { %v287_v38 = vadd.f32 %v286_v37, %v262_v60 }
  0xdb   :  { %v288_v39 = vmul.f32 0.1, %v287_v38 }
  0xdd   :  { %v289_v40 = vadd.f32 %v288_v39, %v258_v36 }
  0xdf   :  { %v358_v41 = vadd.f32 -1.0, %v289_v40 }
  0xe1   :  { %vm291_vm10 = vcmp.gt.f32.partialorder %v358_v41, 0.0 }
  0xe2   :  { %v359_v42 = vsel %vm291_vm10, 1.0, %v370_v15 }
  0xe3   :  { %v294_v43 = vmul.f32 %v413_v3, %v359_v42 }
  0xe5   :  { %v295_v44 = vsel %vm101_vm3, %v294_v43, 0.0 }
  0xe6   :  { %296 = vadd.xlane.f32.xlu0 %v295_v44 }
  0xff   :  { %v104_v51 = vpop.xlane.xlu0 %103 }
 0x100   :  { %v105_v53 = vadd.f32 %v104_v51, %v434_v20 }
 0x102   :  { %v120_v55 = vadd.f32 %v111_v52, %v105_v53 }
 0x104   :  { %v147_v56 = vadd.f32 %v146_v54, %v120_v55  ;;  %v150_v3 = vsub.f32 0.0, %v120_v55 }
 0x106   :  { %v148_v57 = vmul.f32 0.1, %v147_v56  ;;  %v151_v62 = vmul.f32 0.2, %v150_v3 }
 0x108   :  { %v149_v58 = vadd.f32 %v148_v57, %v119_v50  ;;  %v152_v2 = vadd.f32 %v151_v62, %v120_v55 }
 0x10a   :  { %v340_v59 = vadd.f32 -1.0, %v149_v58 }
 0x10c   :  { %vm154_vm11 = vcmp.gt.f32.partialorder %v340_v59, 0.0 }
 0x10d   :  { %v341_v60 = vsel %vm154_vm11, 1.0, %v370_v15 }
 0x10e   :  { %v157_v61 = vsub.f32 1.0, %v341_v60  ;;  %342 = vst.msk [vmem:[%s494_s5 + $0x4] sm:$0x3] %vm79_vm7, %v341_v60  ;;  %v159_v0 = vmul.f32 0.0, %v341_v60 }
 0x110   :  { %v158_v63 = vmul.f32 %v157_v61, %v149_v58 }
 0x111   :  { %v144_v1 = vpop.xlane.xlu1 %143 }
 0x112   :  { %v160_v4 = vadd.f32 %v159_v0, %v158_v63  ;;  %v145_v5 = vadd.f32 %v144_v1, %v434_v20 }
 0x114   :  { %v187_v6 = vsub.f32 0.0, %v160_v4  ;;  %v161_v7 = vadd.f32 %v152_v2, %v145_v5 }
 0x116   :  { %v188_v8 = vadd.f32 %v187_v6, %v161_v7  ;;  %v191_v12 = vsub.f32 0.0, %v161_v7 }
 0x118   :  { %v189_v9 = vmul.f32 0.1, %v188_v8  ;;  %v192_v16 = vmul.f32 0.2, %v191_v12 }
 0x11a   :  { %v190_v10 = vadd.f32 %v189_v9, %v160_v4  ;;  %v193_v21 = vadd.f32 %v192_v16, %v161_v7 }
 0x11c   :  { %v345_v11 = vadd.f32 -1.0, %v190_v10 }
 0x11e   :  { %vm195_vm12 = vcmp.gt.f32.partialorder %v345_v11, 0.0 }
 0x11f   :  { %v346_v13 = vsel %vm195_vm12, 1.0, %v370_v15 }
 0x120   :  { %v198_v14 = vsub.f32 1.0, %v346_v13  ;;  %347 = vst.msk [vmem:[%s494_s5 + $0x6] sm:$0x3] %vm79_vm7, %v346_v13  ;;  %v200_v18 = vmul.f32 0.0, %v346_v13 }
 0x122   :  { %v199_v17 = vmul.f32 %v198_v14, %v190_v10 }
 0x123   :  { %v185_v19 = vpop.xlane.xlu1 %184 }
 0x124   :  { %v201_v22 = vadd.f32 %v200_v18, %v199_v17  ;;  %v186_v23 = vadd.f32 %v185_v19, %v434_v20 }
 0x126   :  { %v226_v24 = vsub.f32 0.0, %v201_v22  ;;  %v202_v25 = vadd.f32 %v193_v21, %v186_v23 }
 0x128   :  { %v227_v26 = vadd.f32 %v226_v24, %v202_v25  ;;  %v230_v30 = vsub.f32 0.0, %v202_v25 }
 0x12a   :  { %v228_v27 = vmul.f32 0.1, %v227_v26  ;;  %v231_v33 = vmul.f32 0.2, %v230_v30 }
 0x12c   :  { %v229_v28 = vadd.f32 %v228_v27, %v201_v22  ;;  %v232_v37 = vadd.f32 %v231_v33, %v202_v25 }
 0x12e   :  { %v350_v29 = vadd.f32 -1.0, %v229_v28 }
 0x130   :  { %vm234_vm13 = vcmp.gt.f32.partialorder %v350_v29, 0.0 }
 0x131   :  { %v351_v31 = vsel %vm234_vm13, 1.0, %v370_v15 }
 0x132   :  { %v237_v32 = vsub.f32 1.0, %v351_v31  ;;  %352 = vst.msk [vmem:[%s494_s5 + $0x8] sm:$0x3] %vm79_vm7, %v351_v31  ;;  %v239_v35 = vmul.f32 0.0, %v351_v31 }
 0x134   :  { %v238_v34 = vmul.f32 %v237_v32, %v229_v28 }
 0x135   :  { %v224_v36 = vpop.xlane.xlu2 %223 }
 0x136   :  { %v240_v38 = vadd.f32 %v239_v35, %v238_v34  ;;  %v225_v39 = vadd.f32 %v224_v36, %v434_v20 }
 0x138   :  { %v268_v40 = vsub.f32 0.0, %v240_v38  ;;  %v241_v41 = vadd.f32 %v232_v37, %v225_v39 }
 0x13a   :  { %v269_v42 = vadd.f32 %v268_v40, %v241_v41  ;;  %v272_v46 = vsub.f32 0.0, %v241_v41 }
 0x13c   :  { %v270_v43 = vmul.f32 0.1, %v269_v42  ;;  %v273_v49 = vmul.f32 0.2, %v272_v46 }
 0x13e   :  { %v271_v44 = vadd.f32 %v270_v43, %v240_v38  ;;  %v274_v53 = vadd.f32 %v273_v49, %v241_v41 }
 0x140   :  { %v355_v45 = vadd.f32 -1.0, %v271_v44 }
 0x142   :  { %vm276_vm14 = vcmp.gt.f32.partialorder %v355_v45, 0.0 }
 0x143   :  { %v356_v47 = vsel %vm276_vm14, 1.0, %v370_v15 }
 0x144   :  { %v279_v48 = vsub.f32 1.0, %v356_v47  ;;  %357 = vst.msk [vmem:[%s494_s5 + $0xa] sm:$0x3] %vm79_vm7, %v356_v47  ;;  %v281_v51 = vmul.f32 0.0, %v356_v47 }
 0x146   :  { %v280_v50 = vmul.f32 %v279_v48, %v271_v44 }
 0x147   :  { %v266_v52 = vpop.xlane.xlu2 %265 }
 0x148   :  { %v282_v54 = vadd.f32 %v281_v51, %v280_v50  ;;  %v267_v55 = vadd.f32 %v266_v52, %v434_v20 }
 0x14a   :  { %v299_v56 = vsub.f32 0.0, %v282_v54  ;;  %v283_v57 = vadd.f32 %v274_v53, %v267_v55 }
 0x14c   :  { %v300_v58 = vadd.f32 %v299_v56, %v283_v57  ;;  %v303_v61 = vsub.f32 0.0, %v283_v57 }
 0x14e   :  { %v301_v59 = vmul.f32 0.1, %v300_v58  ;;  %v304_v63 = vmul.f32 0.2, %v303_v61 }
 0x150   :  { %v302_v3 = vadd.f32 %v301_v59, %v282_v54  ;;  %v305_v5 = vadd.f32 %v304_v63, %v283_v57 }
 0x152   :  { %v360_v60 = vadd.f32 -1.0, %v302_v3 }
 0x154   :  { %vm307_vm15 = vcmp.gt.f32.partialorder %v360_v60, 0.0 }
 0x155   :  { %v361_v62 = vsel %vm307_vm15, 1.0, %v370_v15 }
 0x156   :  { %v310_v0 = vsub.f32 1.0, %v361_v62  ;;  %362 = vst.msk [vmem:[%s494_s5 + $0xc] sm:$0x3] %vm79_vm7, %v361_v62  ;;  %v312_v2 = vmul.f32 0.0, %v361_v62 }
 0x158   :  { %v311_v1 = vmul.f32 %v310_v0, %v302_v3 }
 0x159   :  { %v297_v4 = vpop.xlane.xlu0 %296 }
 0x15a   :  { %v313_v6 = vadd.f32 %v312_v2, %v311_v1  ;;  %v298_v7 = vadd.f32 %v297_v4, %v434_v20 }
 0x15c   :  { %v317_v8 = vsub.f32 0.0, %v313_v6  ;;  %v314_v9 = vadd.f32 %v305_v5, %v298_v7 }
 0x15e   :  { %v318_v10 = vadd.f32 %v317_v8, %v314_v9 }
 0x160   :  { %v319_v11 = vmul.f32 0.1, %v318_v10 }
 0x162   :  { %v320_v12 = vadd.f32 %v319_v11, %v313_v6 }
 0x164   :  { %v363_v13 = vadd.f32 -1.0, %v320_v12 }
 0x166   :  { %vm322_vm0 = vcmp.gt.f32.partialorder %v363_v13, 0.0 }
 0x167   :  { %v364_v14 = vsel %vm322_vm0, 1.0, %v370_v15 }
 0x168   :  { %365 = vst.msk [vmem:[%s494_s5 + $0xe] sm:$0x3] %vm79_vm7, %v364_v14 }

</bundles_post_ra>
